<compile_context>
chip_gen: v6e
topology: v6e:2x2x1
jax: 0.10.0
libtpu: 0.0.40
codegen_flags: <defaults>
</compile_context>

<pallas_src>
import jax
import jax.numpy as jnp
from jax import lax
from jax.experimental import pallas as pl
from jax.experimental.pallas import tpu as pltpu

_LANES = 128
_SUBLANES = 8
# ~2 MiB per input per grid step: DMAs long enough to sit near the HBM
# roofline, small enough (2 inputs x 2 pipeline buffers ~= 8 MiB) to fit every
# generation's default scoped VMEM, including v7x's 64 MiB physical VMEM.
_TARGET_BLOCK_BYTES = 2 * 1024 * 1024


def _round_up(x, m):
    return (x + m - 1) // m * m


def _sam_cos_kernel(a_ref, b_ref, cos_ref):
    """Per-pixel clipped cosine of the spectral angle for one (TR, 128) tile."""
    c_dim, tr, tl = a_ref.shape

    def body(c, carry):
        ip, s1, s2 = carry
        a = a_ref[c].astype(jnp.float32)   # (TR, 128) channel slab
        b = b_ref[c].astype(jnp.float32)
        return ip + a * b, s1 + a * a, s2 + b * b

    zero = jnp.zeros((tr, tl), jnp.float32)
    # Fully unroll only for small channel counts (LLO scheduler visibility)
    # without exploding code size for hyperspectral inputs.
    ip, s1, s2 = lax.fori_loop(0, c_dim, body, (zero, zero, zero),
                               unroll=(c_dim <= 32))

    # sqrt(s1) * sqrt(s2) == sqrt(s1 * s2): one EUP sqrt instead of two.
    denom = jnp.sqrt(s1 * s2) + 1e-10
    cos_ref[...] = jnp.clip(ip / denom, 0.0, 1.0)


def _sam_cos_map(a, b, row_tile):
    """a, b: (C, rows, 128) lane-dense inputs. Returns (rows, 128) f32 cos map."""
    C, rows, lanes = a.shape
    assert lanes == _LANES and b.shape == a.shape
    grid = (pl.cdiv(rows, row_tile),)   # last block may be partial (OOB-safe)

    n_elems = rows * _LANES
    flops = 6 * C * n_elems + 5 * n_elems                   # MACs over C + epilogue
    bytes_accessed = 2 * C * n_elems * a.dtype.itemsize + n_elems * 4

    return pl.pallas_call(
        _sam_cos_kernel,
        out_shape=jax.ShapeDtypeStruct((rows, _LANES), jnp.float32),
        grid=grid,
        in_specs=[
            pl.BlockSpec((C, row_tile, _LANES), lambda i: (0, i, 0)),
            pl.BlockSpec((C, row_tile, _LANES), lambda i: (0, i, 0)),
        ],
        out_specs=pl.BlockSpec((row_tile, _LANES), lambda i: (i, 0)),
        compiler_params=pltpu.CompilerParams(
            # Embarrassingly parallel over spatial tiles: shards across v7x's
            # two TensorCores; no-op on single-TC v5e/v6e.
            dimension_semantics=("parallel",),
            # <= physical VMEM on all of v5e/v6e/v7x; plenty for ~8.5 MiB use.
            vmem_limit_bytes=32 * 1024 * 1024,
        ),
        cost_estimate=pl.CostEstimate(
            flops=int(flops),
            transcendentals=int(n_elems),
            bytes_accessed=int(bytes_accessed),
        ),
    )(a, b)


@jax.jit
def sam_loss(inp, label):
    """Equivalent of SAMLoss.forward(input, label) for (C, H, W) inputs."""
    assert inp.shape == label.shape and inp.ndim == 3
    C, H, W = inp.shape
    n = H * W

    rows = pl.cdiv(n, _LANES)
    lane_pad = rows * _LANES - n
    itemsize = jnp.dtype(inp.dtype).itemsize

    # Row tile sized so each input block is ~_TARGET_BLOCK_BYTES, multiple of
    # the 8-sublane granule, clamped to the real row count (a block dim equal
    # to the full array dim is always layout-legal, even if not 8-aligned).
    row_tile = max(_SUBLANES,
                   (_TARGET_BLOCK_BYTES // (C * _LANES * itemsize))
                   // _SUBLANES * _SUBLANES)
    row_tile = min(row_tile, rows)

    def to_lane_dense(x):
        x = x.reshape(C, n)                     # contiguous reshape: free
        if lane_pad:
            # Zero padding -> padded pixels get cos == 0; sliced off below.
            x = jnp.pad(x, ((0, 0), (0, lane_pad)))
        return x.reshape(C, rows, _LANES)

    cos = _sam_cos_map(to_lane_dense(inp), to_lane_dense(label), row_tile)
    cos = cos.reshape(-1)[:n]

    # arccos + mean on the small cosine map (glue, outside the kernel).
    return jnp.mean(jnp.arccos(cos))


def _sam_ref(img1, img2):
    """Pure-JAX reference mirroring the PyTorch _sam()."""
    inner = jnp.sum(img1 * img2, axis=0)
    n1 = jnp.sqrt(jnp.sum(img1 ** 2, axis=0))
    n2 = jnp.sqrt(jnp.sum(img2 ** 2, axis=0))
    cos_theta = jnp.clip(inner / (n1 * n2 + 1e-10), 0.0, 1.0)
    return jnp.mean(jnp.arccos(cos_theta))


if __name__ == "__main__":
    # SAMLoss has no learnable parameters; only inputs are needed.
    C, H, W = 4, 16, 16
    key = jax.random.PRNGKey(0)
    k1, k2 = jax.random.split(key)
    img1 = jax.random.uniform(k1, (C, H, W), dtype=jnp.float32)
    img2 = jax.random.uniform(k2, (C, H, W), dtype=jnp.float32)

    loss = jax.block_until_ready(sam_loss(img1, img2))
    ref = jax.block_until_ready(_sam_ref(img1, img2))
    assert jnp.allclose(loss, ref, atol=2e-5, rtol=2e-5), (loss, ref)

    print("KERNEL_OK")
</pallas_src>

<mosaic_0001>
module attributes {stable_mosaic.version = 11 : i64} {
  func.func @_sam_cos_kernel(%arg0: i32, %arg1: memref<4x2x128xf32, #tpu.memory_space<vmem>>, %arg2: memref<4x2x128xf32, #tpu.memory_space<vmem>>, %arg3: memref<2x128xf32, #tpu.memory_space<vmem>>) attributes {dimension_semantics = [#tpu.dimension_semantics<parallel>], iteration_bounds = array<i64: 1>, scalar_prefetch = 0 : i64, scratch_operands = 0 : i64, tpu.core_type = #tpu.core_type<tc>, window_params = [{transform_indices = @transform_0, window_bounds = array<i64: 4, 2, 128>}, {transform_indices = @transform_1, window_bounds = array<i64: 4, 2, 128>}, {transform_indices = @transform_2, window_bounds = array<i64: 2, 128>}]} {
    %cst = arith.constant 0.000000e+00 : f32
    %0 = vector.broadcast %cst : f32 to vector<2x128xf32>
    %c0_i32 = arith.constant 0 : i32
    %1 = arith.index_cast %c0_i32 : i32 to index
    %c0 = arith.constant 0 : index
    %c0_0 = arith.constant 0 : index
    %2 = vector.load %arg1[%1, %c0, %c0_0] : memref<4x2x128xf32, #tpu.memory_space<vmem>>, vector<1x2x128xf32>
    %3 = vector.shape_cast %2 : vector<1x2x128xf32> to vector<2x128xf32>
    %4 = arith.index_cast %c0_i32 : i32 to index
    %c0_1 = arith.constant 0 : index
    %c0_2 = arith.constant 0 : index
    %5 = vector.load %arg2[%4, %c0_1, %c0_2] : memref<4x2x128xf32, #tpu.memory_space<vmem>>, vector<1x2x128xf32>
    %6 = vector.shape_cast %5 : vector<1x2x128xf32> to vector<2x128xf32>
    %7 = arith.mulf %3, %6 : vector<2x128xf32>
    %8 = arith.addf %0, %7 : vector<2x128xf32>
    %9 = arith.mulf %3, %3 : vector<2x128xf32>
    %10 = arith.addf %0, %9 : vector<2x128xf32>
    %11 = arith.mulf %6, %6 : vector<2x128xf32>
    %12 = arith.addf %0, %11 : vector<2x128xf32>
    %c1_i32 = arith.constant 1 : i32
    %13 = arith.index_cast %c1_i32 : i32 to index
    %c0_3 = arith.constant 0 : index
    %c0_4 = arith.constant 0 : index
    %14 = vector.load %arg1[%13, %c0_3, %c0_4] : memref<4x2x128xf32, #tpu.memory_space<vmem>>, vector<1x2x128xf32>
    %15 = vector.shape_cast %14 : vector<1x2x128xf32> to vector<2x128xf32>
    %16 = arith.index_cast %c1_i32 : i32 to index
    %c0_5 = arith.constant 0 : index
    %c0_6 = arith.constant 0 : index
    %17 = vector.load %arg2[%16, %c0_5, %c0_6] : memref<4x2x128xf32, #tpu.memory_space<vmem>>, vector<1x2x128xf32>
    %18 = vector.shape_cast %17 : vector<1x2x128xf32> to vector<2x128xf32>
    %19 = arith.mulf %15, %18 : vector<2x128xf32>
    %20 = arith.addf %8, %19 : vector<2x128xf32>
    %21 = arith.mulf %15, %15 : vector<2x128xf32>
    %22 = arith.addf %10, %21 : vector<2x128xf32>
    %23 = arith.mulf %18, %18 : vector<2x128xf32>
    %24 = arith.addf %12, %23 : vector<2x128xf32>
    %c2_i32 = arith.constant 2 : i32
    %25 = arith.index_cast %c2_i32 : i32 to index
    %c0_7 = arith.constant 0 : index
    %c0_8 = arith.constant 0 : index
    %26 = vector.load %arg1[%25, %c0_7, %c0_8] : memref<4x2x128xf32, #tpu.memory_space<vmem>>, vector<1x2x128xf32>
    %27 = vector.shape_cast %26 : vector<1x2x128xf32> to vector<2x128xf32>
    %28 = arith.index_cast %c2_i32 : i32 to index
    %c0_9 = arith.constant 0 : index
    %c0_10 = arith.constant 0 : index
    %29 = vector.load %arg2[%28, %c0_9, %c0_10] : memref<4x2x128xf32, #tpu.memory_space<vmem>>, vector<1x2x128xf32>
    %30 = vector.shape_cast %29 : vector<1x2x128xf32> to vector<2x128xf32>
    %31 = arith.mulf %27, %30 : vector<2x128xf32>
    %32 = arith.addf %20, %31 : vector<2x128xf32>
    %33 = arith.mulf %27, %27 : vector<2x128xf32>
    %34 = arith.addf %22, %33 : vector<2x128xf32>
    %35 = arith.mulf %30, %30 : vector<2x128xf32>
    %36 = arith.addf %24, %35 : vector<2x128xf32>
    %c3_i32 = arith.constant 3 : i32
    %37 = arith.index_cast %c3_i32 : i32 to index
    %c0_11 = arith.constant 0 : index
    %c0_12 = arith.constant 0 : index
    %38 = vector.load %arg1[%37, %c0_11, %c0_12] : memref<4x2x128xf32, #tpu.memory_space<vmem>>, vector<1x2x128xf32>
    %39 = vector.shape_cast %38 : vector<1x2x128xf32> to vector<2x128xf32>
    %40 = arith.index_cast %c3_i32 : i32 to index
    %c0_13 = arith.constant 0 : index
    %c0_14 = arith.constant 0 : index
    %41 = vector.load %arg2[%40, %c0_13, %c0_14] : memref<4x2x128xf32, #tpu.memory_space<vmem>>, vector<1x2x128xf32>
    %42 = vector.shape_cast %41 : vector<1x2x128xf32> to vector<2x128xf32>
    %43 = arith.mulf %39, %42 : vector<2x128xf32>
    %44 = arith.addf %32, %43 : vector<2x128xf32>
    %45 = arith.mulf %39, %39 : vector<2x128xf32>
    %46 = arith.addf %34, %45 : vector<2x128xf32>
    %47 = arith.mulf %42, %42 : vector<2x128xf32>
    %48 = arith.addf %36, %47 : vector<2x128xf32>
    %c4_i32 = arith.constant 4 : i32
    %49 = arith.mulf %46, %48 : vector<2x128xf32>
    %50 = math.sqrt %49 : vector<2x128xf32>
    %cst_15 = arith.constant 1.000000e-10 : f32
    %51 = vector.broadcast %cst_15 : f32 to vector<2x128xf32>
    %52 = arith.addf %50, %51 : vector<2x128xf32>
    %53 = arith.divf %44, %52 : vector<2x128xf32>
    %cst_16 = arith.constant 0.000000e+00 : f32
    %cst_17 = arith.constant 1.000000e+00 : f32
    %54 = vector.broadcast %cst_16 : f32 to vector<2x128xf32>
    %55 = arith.maximumf %54, %53 : vector<2x128xf32>
    %56 = vector.broadcast %cst_17 : f32 to vector<2x128xf32>
    %57 = arith.minimumf %56, %55 : vector<2x128xf32>
    %c0_18 = arith.constant 0 : index
    %c0_19 = arith.constant 0 : index
    %58 = vector.load %arg3[%c0_18, %c0_19] : memref<2x128xf32, #tpu.memory_space<vmem>>, vector<2x128xf32>
    tpu.vector_store %arg3[%c0_18, %c0_19], %57 {strides = array<i32>} : memref<2x128xf32, #tpu.memory_space<vmem>>, vector<2x128xf32>,
    return
  }
  func.func @transform_0(%arg0: i32) -> (i32, i32, i32) {
    %c0_i32 = arith.constant 0 : i32
    %c0_i32_0 = arith.constant 0 : i32
    %c0_i32_1 = arith.constant 0 : i32
    return %c0_i32, %arg0, %c0_i32_0 : i32, i32, i32
  }
  func.func @transform_1(%arg0: i32) -> (i32, i32, i32) {
    %c0_i32 = arith.constant 0 : i32
    %c0_i32_0 = arith.constant 0 : i32
    %c0_i32_1 = arith.constant 0 : i32
    return %c0_i32, %arg0, %c0_i32_0 : i32, i32, i32
  }
  func.func @transform_2(%arg0: i32) -> (i32, i32) {
    %c0_i32 = arith.constant 0 : i32
    %c0_i32_0 = arith.constant 0 : i32
    return %arg0, %c0_i32 : i32, i32
  }
}

</mosaic_0001>

<bundles_post_ra>
// kernel: sam_loss.1
= control target key start
LH: loop header
LB: loop body
LE: loop exit
PB: predicated region body
PF: predicated region fallthrough
CT: control target
= control target key end

     0   :  { %s119_s0 = inlined_call_operand.vmem [shape: f32[4,2,128], index: 0, kind: input, shape index: {}]   ;;  %s120_s1 = inlined_call_operand.vmem [shape: f32[4,2,128], index: 1, kind: input, shape index: {}]   ;;  %s121_s2 = inlined_call_operand.vmem [shape: f32[2,128], index: 2, kind: output, shape index: {}]  }
   0x1   :  { %v11_v0 = vld [vmem:[%s119_s0] sm:$0x3]  ;;  %v67_v2 = vld [vmem:[%s119_s0 + $0x2] sm:$0x3]  ;;  %v69_v7 = vld [vmem:[%s119_s0 + $0x4] sm:$0x3] }
   0x2   :  { %v12_v1 = vld [vmem:[%s120_s1] sm:$0x3]  ;;  %v15_v3 = vmul.f32 %v11_v0, %v11_v0  ;;  %v68_v5 = vld [vmem:[%s120_s1 + $0x2] sm:$0x3]  ;;  %v25_v6 = vmul.f32 %v67_v2, %v67_v2  ;;  %v70_v8 = vld [vmem:[%s120_s1 + $0x4] sm:$0x3]  ;;  %v35_v10 = vmul.f32 %v69_v7, %v69_v7 }
   0x3   :  { %v17_v4 = vmul.f32 %v12_v1, %v12_v1  ;;  %v27_v9 = vmul.f32 %v68_v5, %v68_v5  ;;  %v71_v11 = vld [vmem:[%s119_s0 + $0x6] sm:$0x3]  ;;  %v37_v14 = vmul.f32 %v70_v8, %v70_v8  ;;  %v13_v28 = vmul.f32 %v12_v1, %v11_v0 }
   0x4   :  { %v72_v12 = vld [vmem:[%s120_s1 + $0x6] sm:$0x3]  ;;  %v26_v13 = vadd.f32 %v25_v6, %v15_v3  ;;  %v45_v15 = vmul.f32 %v71_v11, %v71_v11  ;;  %v23_v29 = vmul.f32 %v68_v5, %v67_v2  ;;  %v33_v32 = vmul.f32 %v70_v8, %v69_v7 }
   0x5   :  { %v28_v16 = vadd.f32 %v27_v9, %v17_v4  ;;  %v47_v17 = vmul.f32 %v72_v12, %v72_v12  ;;  %v43_v34 = vmul.f32 %v72_v12, %v71_v11 }
   0x6   :  { %v36_v18 = vadd.f32 %v35_v10, %v26_v13  ;;  %v24_v31 = vadd.f32 %v23_v29, %v13_v28 }
   0x7   :  { %v38_v19 = vadd.f32 %v37_v14, %v28_v16 }
   0x8   :  { %v46_v20 = vadd.f32 %v45_v15, %v36_v18  ;;  %v34_v33 = vadd.f32 %v33_v32, %v24_v31 }
   0x9   :  { %v48_v21 = vadd.f32 %v47_v17, %v38_v19 }
   0xa   :  { %v44_v35 = vadd.f32 %v43_v34, %v34_v33 }
   0xb   :  { %v49_v22 = vmul.f32 %v48_v21, %v46_v20 }
   0xd   :  { %73 = vrsqrt.f32 %v49_v22  ;;  %vm52_vm0 = vcmp.eq.f32.partialorder %v49_v22, inf  ;;  %v55_v24 = vand.u32 2147483648, %v49_v22  ;;  %vm54_vm1 = vcmp.eq.f32.partialorder %v49_v22, 0.0 }
  0x1a   :  { %v74_v23 = vpop.eup %73 }
  0x1b   :  { %v51_v25 = vmul.f32 %v74_v23, %v49_v22 }
  0x1d   :  { %v53_v26 = vsel %vm52_vm0, %v49_v22, %v51_v25 }
  0x1e   :  { %v56_v27 = vsel %vm54_vm1, %v55_v24, %v53_v26 }
  0x1f   :  { %v57_v30 = vadd.f32 1e-10, %v56_v27 }
  0x21   :  { %75 = vrcp.f32 %v57_v30 }
  0x2e   :  { %v76_v36 = vpop.eup %75 }
  0x2f   :  { %v59_v37 = vmul.f32 %v76_v36, %v44_v35 }
  0x31   :  { %v60_v38 = vmax.f32 %v59_v37, 0.0 }
  0x33   :  { %v61_v39 = vmin.f32 %v60_v38, 1.0 }
  0x35   :  { %62 = vst [vmem:[%s121_s2] sm:$0x3] %v61_v39 }

</bundles_post_ra>
